<compile_context>
chip_gen: v7x
topology: tpu7x:2x2x1
jax: 0.10.0
libtpu: 0.0.40
codegen_flags: <defaults>
</compile_context>

<pallas_src>
import functools

import jax
import jax.numpy as jnp
from jax import lax
from jax.experimental import pallas as pl
from jax.experimental.pallas import tpu as pltpu

_LANE = 128
_SUBLANE = 8
_ROI_SENTINEL = 0.85        # pixel value marking "outside ROI"


def _round_up(x, m):
    return (x + m - 1) // m * m


def _cdiv(a, b):
    return -(-a // b)


def _device_config():
    """(num_core_shards, max_row_tile) chosen per TPU generation."""
    try:
        kind = jax.devices()[0].device_kind.lower()
    except Exception:  # pragma: no cover - no backend at trace time
        kind = ""
    if "v7" in kind or "7x" in kind:
        # 2 TensorCores per chip; 2 MiB/input block (8 MiB double-buffered).
        return 2, 4096
    if "v6" in kind:
        # Single TC; 2 MiB/input block fits the 32 MiB default scoped VMEM.
        return 1, 4096
    # v5e / older / unknown: single TC, conservative 1 MiB blocks
    # (4 MiB double-buffered, well inside v5e's 16 MiB default scoped VMEM).
    return 1, 2048


def _choose_grid(rows, num_shards_req, max_tile):
    """Exact-cover grid: (shards, steps_per_shard, steps_total, tr)."""
    # Largest 8-multiple tile that does not exceed the row count (rows >= 8).
    tr_cap = min(max_tile, (rows // _SUBLANE) * _SUBLANE)
    for shards in dict.fromkeys((num_shards_req, 1)):
        steps_total_raw = _cdiv(rows, tr_cap)
        steps_per_shard = _cdiv(steps_total_raw, shards)
        steps_total = shards * steps_per_shard
        tr = min(_round_up(_cdiv(rows, steps_total), _SUBLANE), tr_cap)
        # Require: every grid step touches at least one real row (no fully
        # out-of-range block index, no wasted DMA).  Always true for shards=1.
        if (steps_total - 1) * tr < rows:
            return shards, steps_per_shard, steps_total, tr
    raise AssertionError("unreachable: shards=1 always satisfies exact cover")


def _jaccard_kernel(yt_ref, yp_ref, out_ref, inter_acc, sum_acc, *,
                    filter_roi, tr, steps_per_shard, rows_valid, mask_rows):
    c = pl.program_id(0)   # core-shard axis ("parallel")
    i = pl.program_id(1)   # reduction axis   ("arbitrary")

    @pl.when(i == 0)
    def _init():
        inter_acc[...] = jnp.zeros_like(inter_acc)
        sum_acc[...] = jnp.zeros_like(sum_acc)

    def accumulate(mask_tail):
        yt = yt_ref[...]            # (tr, 128) float32
        yp = yp_ref[...]
        ayt = jnp.abs(yt)
        ayp = jnp.abs(yp)
        inter = ayt * ayp           # == |yt * yp|
        total = ayt + ayp           # == |yt| + |yp|
        keep = None
        if filter_roi:
            keep = yt != jnp.float32(_ROI_SENTINEL)
        if mask_tail:
            # Rows past the true row count (ragged trailing tile only).
            row = (c * steps_per_shard + i) * tr + lax.broadcasted_iota(
                jnp.int32, (tr, _LANE), 0)
            tail = row < rows_valid
            keep = tail if keep is None else jnp.logical_and(keep, tail)
        if keep is not None:
            zero = jnp.zeros((), jnp.float32)
            # Select on the results: garbage/NaN from out-of-range rows is
            # zeroed even if it already propagated through the mul/add.
            inter = jnp.where(keep, inter, zero)
            total = jnp.where(keep, total, zero)
        # Reduce only along the (untiled) leading axis: element-wise VPU adds
        # into vreg-shaped accumulators; no cross-lane work in the hot loop.
        inter_acc[...] += jnp.sum(
            inter.reshape(tr // _SUBLANE, _SUBLANE, _LANE), axis=0)
        sum_acc[...] += jnp.sum(
            total.reshape(tr // _SUBLANE, _SUBLANE, _LANE), axis=0)

    if mask_rows:
        tile_end = (c * steps_per_shard + i + 1) * tr
        is_ragged = tile_end > rows_valid

        @pl.when(jnp.logical_not(is_ragged))
        def _full_tile():
            accumulate(False)       # fast path: no iota/compare/and

        @pl.when(is_ragged)
        def _ragged_tile():
            accumulate(True)        # only the single trailing tile
    else:
        accumulate(False)

    @pl.when(i == pl.num_programs(1) - 1)
    def _finalize():
        out_ref[0, 0, :, :] = inter_acc[...]
        out_ref[0, 1, :, :] = sum_acc[...]


def jaccard_loss(y_true, y_pred, *, filter_roi: bool, smooth: float = 100.0):
    """Pallas implementation of Jaccard.forward. Returns a scalar float32."""
    assert y_true.shape == y_pred.shape
    batch_size = y_true.shape[0]

    # Keep float32: the ROI sentinel compare (== 0.85) must not be down-cast.
    yt = jnp.asarray(y_true, jnp.float32).reshape(-1)
    yp = jnp.asarray(y_pred, jnp.float32).reshape(-1)
    n = yt.shape[0]

    # Only pad (a copy) when the element count is not lane-aligned or the
    # array is tiny; zero padding is exact (zeros contribute 0 to every sum,
    # and 0 != 0.85 so the ROI filter is unaffected).
    target = max(_round_up(n, _LANE), _SUBLANE * _LANE)
    if target != n:
        yt = jnp.pad(yt, (0, target - n))
        yp = jnp.pad(yp, (0, target - n))
    rows = target // _LANE
    yt2 = yt.reshape(rows, _LANE)   # lane-dense slab; free reshape (no copy)
    yp2 = yp.reshape(rows, _LANE)

    num_shards_req, max_tile = _device_config()
    num_shards, steps_per_shard, steps_total, tr = _choose_grid(
        rows, num_shards_req, max_tile)
    # Masking is only needed for the single ragged trailing tile (if any).
    mask_rows = (steps_total * tr) != rows

    def row_block_map(c, i, sps=steps_per_shard):
        return (c * sps + i, 0)     # exact cover: no clamp, no duplicate reads

    kernel = functools.partial(
        _jaccard_kernel,
        filter_roi=bool(filter_roi),
        tr=tr,
        steps_per_shard=steps_per_shard,
        rows_valid=rows,
        mask_rows=mask_rows,
    )

    partials = pl.pallas_call(
        kernel,
        out_shape=jax.ShapeDtypeStruct(
            (num_shards, 2, _SUBLANE, _LANE), jnp.float32),
        grid_spec=pltpu.PrefetchScalarGridSpec(
            num_scalar_prefetch=0,
            grid=(num_shards, steps_per_shard),
            in_specs=[
                pl.BlockSpec((tr, _LANE), row_block_map),
                pl.BlockSpec((tr, _LANE), row_block_map),
            ],
            out_specs=pl.BlockSpec((1, 2, _SUBLANE, _LANE),
                                   lambda c, i: (c, 0, 0, 0)),
            scratch_shapes=[
                pltpu.VMEM((_SUBLANE, _LANE), jnp.float32),  # intersection acc
                pltpu.VMEM((_SUBLANE, _LANE), jnp.float32),  # |yt|+|yp| acc
            ],
        ),
        compiler_params=pltpu.CompilerParams(
            dimension_semantics=("parallel", "arbitrary"),
        ),
        cost_estimate=pl.CostEstimate(
            flops=4 * n, transcendentals=0, bytes_accessed=8 * n),
    )(yt2, yp2)

    # Tiny finalization on the (shards, 2, 8, 128) partials in plain JAX.
    inter = jnp.sum(partials[:, 0])
    total = jnp.sum(partials[:, 1])
    smooth_f = jnp.float32(smooth)
    jac = (inter + smooth_f) / (total - inter + smooth_f)
    return (jnp.float32(1.0) - jac) * smooth_f / jnp.float32(batch_size)


def _jaccard_ref(y_true, y_pred, *, filter_roi, smooth=100.0):
    """Pure-JAX reference mirroring the PyTorch module."""
    batch_size = y_true.shape[0]
    yt = jnp.asarray(y_true, jnp.float32)
    yp = jnp.asarray(y_pred, jnp.float32)
    if filter_roi:
        keep = yt != jnp.float32(_ROI_SENTINEL)
        yt = jnp.where(keep, yt, 0.0)
        yp = jnp.where(keep, yp, 0.0)
    inter = jnp.sum(jnp.abs(yt * yp))
    total = jnp.sum(jnp.abs(yt) + jnp.abs(yp))
    jac = (inter + smooth) / (total - inter + smooth)
    return (1.0 - jac) * smooth / batch_size


def _make_inputs(shape, key):
    k_pred, k_true, k_roi = jax.random.split(key, 3)
    y_pred = jax.random.uniform(k_pred, shape, jnp.float32)
    y_true = (jax.random.uniform(k_true, shape) > 0.5).astype(jnp.float32)
    # Mark ~10% of pixels as outside the ROI (value 0.85).
    outside = jax.random.uniform(k_roi, shape) < 0.1
    y_true = jnp.where(outside, jnp.float32(_ROI_SENTINEL), y_true)
    return y_true, y_pred


if __name__ == "__main__":
    key = jax.random.PRNGKey(0)
    k0, k1 = jax.random.split(key)

    ok = True
    # Main NCHW case (lane-aligned, single full tile, no pad copy) plus a
    # ragged case (exercises the lane pad, the multi-step reduction grid and
    # the pl.when-gated ragged-tile mask path).
    for shape, k in (((2, 4, 16, 16), k0), ((2, 3, 15, 17), k1)):
        y_true, y_pred = _make_inputs(shape, k)
        for filter_roi in (True, False):
            d = jaccard_loss(y_true, y_pred, filter_roi=filter_roi, smooth=100.0)
            d = jax.block_until_ready(d)
            d_ref = _jaccard_ref(y_true, y_pred, filter_roi=filter_roi,
                                 smooth=100.0)
            if not jnp.allclose(d, d_ref, rtol=1e-5, atol=1e-5):
                ok = False
                print(f"MISMATCH shape={shape} filter_roi={filter_roi}: "
                      f"{float(d)} vs {float(d_ref)}")

    if ok:
        print("KERNEL_OK")
</pallas_src>

<mosaic_0001>
module attributes {stable_mosaic.version = 11 : i64} {
  func.func @_jaccard_kernel(%arg0: i32, %arg1: i32, %arg2: memref<16x128xf32, #tpu.memory_space<vmem>>, %arg3: memref<16x128xf32, #tpu.memory_space<vmem>>, %arg4: memref<1x2x8x128xf32, #tpu.memory_space<vmem>>, %arg5: memref<8x128xf32, #tpu.memory_space<vmem>>, %arg6: memref<8x128xf32, #tpu.memory_space<vmem>>) attributes {dimension_semantics = [#tpu.dimension_semantics<parallel>, #tpu.dimension_semantics<arbitrary>], iteration_bounds = array<i64: 1, 1>, scalar_prefetch = 0 : i64, scratch_operands = 2 : i64, tpu.core_type = #tpu.core_type<tc>, window_params = [{transform_indices = @transform_0, window_bounds = array<i64: 16, 128>}, {transform_indices = @transform_1, window_bounds = array<i64: 16, 128>}, {transform_indices = @transform_2, window_bounds = array<i64: 1, 2, 8, 128>}]} {
    %c0_i32 = arith.constant 0 : i32
    %0 = arith.cmpi eq, %arg1, %c0_i32 : i32
    %1 = arith.extui %0 : i1 to i32
    %c0_i32_0 = arith.constant 0 : i32
    %2 = arith.cmpi ne, %1, %c0_i32_0 : i32
    scf.if %2 {
      %cst_18 = arith.constant 0.000000e+00 : f32
      %28 = vector.broadcast %cst_18 : f32 to vector<8x128xf32>
      %c0_19 = arith.constant 0 : index
      %c0_20 = arith.constant 0 : index
      %29 = vector.load %arg5[%c0_19, %c0_20] : memref<8x128xf32, #tpu.memory_space<vmem>>, vector<8x128xf32>
      tpu.vector_store %arg5[%c0_19, %c0_20], %28 {strides = array<i32>} : memref<8x128xf32, #tpu.memory_space<vmem>>, vector<8x128xf32>,
      %cst_21 = arith.constant 0.000000e+00 : f32
      %30 = vector.broadcast %cst_21 : f32 to vector<8x128xf32>
      %c0_22 = arith.constant 0 : index
      %c0_23 = arith.constant 0 : index
      %31 = vector.load %arg6[%c0_22, %c0_23] : memref<8x128xf32, #tpu.memory_space<vmem>>, vector<8x128xf32>
      tpu.vector_store %arg6[%c0_22, %c0_23], %30 {strides = array<i32>} : memref<8x128xf32, #tpu.memory_space<vmem>>, vector<8x128xf32>,
    } else {
    }
    %c0 = arith.constant 0 : index
    %c0_1 = arith.constant 0 : index
    %3 = vector.load %arg2[%c0, %c0_1] : memref<16x128xf32, #tpu.memory_space<vmem>>, vector<16x128xf32>
    %c0_2 = arith.constant 0 : index
    %c0_3 = arith.constant 0 : index
    %4 = vector.load %arg3[%c0_2, %c0_3] : memref<16x128xf32, #tpu.memory_space<vmem>>, vector<16x128xf32>
    %5 = math.absf %3 : vector<16x128xf32>
    %6 = math.absf %4 : vector<16x128xf32>
    %7 = arith.mulf %5, %6 : vector<16x128xf32>
    %8 = arith.addf %5, %6 : vector<16x128xf32>
    %cst = arith.constant 8.500000e-01 : f32
    %9 = vector.broadcast %cst : f32 to vector<16x128xf32>
    %10 = arith.cmpf one, %3, %9 : vector<16x128xf32>
    %cst_4 = arith.constant 0.000000e+00 : f32
    %11 = vector.broadcast %cst_4 : f32 to vector<16x128xf32>
    %12 = arith.select %10, %7, %11 : vector<16x128xi1>, vector<16x128xf32>
    %cst_5 = arith.constant 0.000000e+00 : f32
    %13 = vector.broadcast %cst_5 : f32 to vector<16x128xf32>
    %14 = arith.select %10, %8, %13 : vector<16x128xi1>, vector<16x128xf32>
    %c0_6 = arith.constant 0 : index
    %c0_7 = arith.constant 0 : index
    %15 = vector.load %arg5[%c0_6, %c0_7] : memref<8x128xf32, #tpu.memory_space<vmem>>, vector<8x128xf32>
    %16 = vector.shape_cast %12 : vector<16x128xf32> to vector<2x8x128xf32>
    %cst_8 = arith.constant dense<0.000000e+00> : vector<8x128xf32>
    %17 = vector.multi_reduction <add>, %16, %cst_8 [0] : vector<2x8x128xf32> to vector<8x128xf32>
    %18 = arith.addf %15, %17 : vector<8x128xf32>
    %c0_9 = arith.constant 0 : index
    %c0_10 = arith.constant 0 : index
    %19 = vector.load %arg5[%c0_9, %c0_10] : memref<8x128xf32, #tpu.memory_space<vmem>>, vector<8x128xf32>
    tpu.vector_store %arg5[%c0_9, %c0_10], %18 {strides = array<i32>} : memref<8x128xf32, #tpu.memory_space<vmem>>, vector<8x128xf32>,
    %c0_11 = arith.constant 0 : index
    %c0_12 = arith.constant 0 : index
    %20 = vector.load %arg6[%c0_11, %c0_12] : memref<8x128xf32, #tpu.memory_space<vmem>>, vector<8x128xf32>
    %21 = vector.shape_cast %14 : vector<16x128xf32> to vector<2x8x128xf32>
    %cst_13 = arith.constant dense<0.000000e+00> : vector<8x128xf32>
    %22 = vector.multi_reduction <add>, %21, %cst_13 [0] : vector<2x8x128xf32> to vector<8x128xf32>
    %23 = arith.addf %20, %22 : vector<8x128xf32>
    %c0_14 = arith.constant 0 : index
    %c0_15 = arith.constant 0 : index
    %24 = vector.load %arg6[%c0_14, %c0_15] : memref<8x128xf32, #tpu.memory_space<vmem>>, vector<8x128xf32>
    tpu.vector_store %arg6[%c0_14, %c0_15], %23 {strides = array<i32>} : memref<8x128xf32, #tpu.memory_space<vmem>>, vector<8x128xf32>,
    %c0_i32_16 = arith.constant 0 : i32
    %25 = arith.cmpi eq, %arg1, %c0_i32_16 : i32
    %26 = arith.extui %25 : i1 to i32
    %c0_i32_17 = arith.constant 0 : i32
    %27 = arith.cmpi ne, %26, %c0_i32_17 : i32
    scf.if %27 {
      %c0_18 = arith.constant 0 : index
      %c0_19 = arith.constant 0 : index
      %28 = vector.load %arg5[%c0_18, %c0_19] : memref<8x128xf32, #tpu.memory_space<vmem>>, vector<8x128xf32>
      %c0_20 = arith.constant 0 : index
      %c0_21 = arith.constant 0 : index
      %c0_22 = arith.constant 0 : index
      %c0_23 = arith.constant 0 : index
      %29 = vector.load %arg4[%c0_20, %c0_21, %c0_22, %c0_23] : memref<1x2x8x128xf32, #tpu.memory_space<vmem>>, vector<1x1x8x128xf32>
      %30 = vector.shape_cast %29 : vector<1x1x8x128xf32> to vector<8x128xf32>
      %31 = vector.shape_cast %28 : vector<8x128xf32> to vector<1x1x8x128xf32>
      tpu.vector_store %arg4[%c0_20, %c0_21, %c0_22, %c0_23], %31 {strides = array<i32>} : memref<1x2x8x128xf32, #tpu.memory_space<vmem>>, vector<1x1x8x128xf32>,
      %c0_24 = arith.constant 0 : index
      %c0_25 = arith.constant 0 : index
      %32 = vector.load %arg6[%c0_24, %c0_25] : memref<8x128xf32, #tpu.memory_space<vmem>>, vector<8x128xf32>
      %c0_26 = arith.constant 0 : index
      %c1 = arith.constant 1 : index
      %c0_27 = arith.constant 0 : index
      %c0_28 = arith.constant 0 : index
      %33 = vector.load %arg4[%c0_26, %c1, %c0_27, %c0_28] : memref<1x2x8x128xf32, #tpu.memory_space<vmem>>, vector<1x1x8x128xf32>
      %34 = vector.shape_cast %33 : vector<1x1x8x128xf32> to vector<8x128xf32>
      %35 = vector.shape_cast %32 : vector<8x128xf32> to vector<1x1x8x128xf32>
      tpu.vector_store %arg4[%c0_26, %c1, %c0_27, %c0_28], %35 {strides = array<i32>} : memref<1x2x8x128xf32, #tpu.memory_space<vmem>>, vector<1x1x8x128xf32>,
    } else {
    }
    return
  }
  func.func @transform_0(%arg0: i32, %arg1: i32) -> (i32, i32) {
    %c1_i32 = arith.constant 1 : i32
    %0 = arith.muli %arg0, %c1_i32 : i32
    %1 = arith.addi %0, %arg1 : i32
    %c0_i32 = arith.constant 0 : i32
    %c0_i32_0 = arith.constant 0 : i32
    return %1, %c0_i32 : i32, i32
  }
  func.func @transform_1(%arg0: i32, %arg1: i32) -> (i32, i32) {
    %c1_i32 = arith.constant 1 : i32
    %0 = arith.muli %arg0, %c1_i32 : i32
    %1 = arith.addi %0, %arg1 : i32
    %c0_i32 = arith.constant 0 : i32
    %c0_i32_0 = arith.constant 0 : i32
    return %1, %c0_i32 : i32, i32
  }
  func.func @transform_2(%arg0: i32, %arg1: i32) -> (i32, i32, i32, i32) {
    %c0_i32 = arith.constant 0 : i32
    %c0_i32_0 = arith.constant 0 : i32
    %c0_i32_1 = arith.constant 0 : i32
    %c0_i32_2 = arith.constant 0 : i32
    return %arg0, %c0_i32, %c0_i32_0, %c0_i32_1 : i32, i32, i32, i32
  }
}

</mosaic_0001>

<bundles_post_ra>
// kernel: tpu_custom_call.1
= control target key start
LH: loop header
LB: loop body
LE: loop exit
PB: predicated region body
PF: predicated region fallthrough
CT: control target
= control target key end

     0   :  { %7 = vsyncpa [#allocation5], 0  ;;  %s252_s0 = inlined_call_operand.hbm [shape: f32[16,128], index: 0, kind: input, shape index: {}]   ;;  %s253_s1 = inlined_call_operand.hbm [shape: f32[16,128], index: 1, kind: input, shape index: {}]   ;;  %s254_s2 = inlined_call_operand.hbm [shape: f32[1,2,8,128], index: 2, kind: output, shape index: {}]  }
   0x1   :  { %8 = vsyncpa [#allocation8], 0 }
   0x2   :  { %9 = vsyncpa [#allocation6], 0  ;;  %s187_s9 = smov [#allocation4]   ;;  %s115_s13 = scalar_lea.hbm %s252_s0, 256 }
   0x3   :  { %s19_s10 = sshll.u32 %s187_s9, 4  ;;  %p116_p0 = scmp.ne.s32.totalorder %s252_s0, %s115_s13  ;;  %s20_s10 = int_to_ptr.vmem [resolvable:$true] %s19_s10 }
   0x4   :  { %p119_p1 = scmp.lt.u32.totalorder %s115_s13, %s252_s0 }
   0x6   :  { %p121_p2 = pnand %p119_p1, %p116_p0 }
   0x8   :  { %124 = shalt.err (!%p121_p2)
}
   0x9   :  { %s125_s18 = scalar_lea.vmem %s20_s10, 256  ;;  %p130_p4 = scmp.lt.s32.totalorder %s20_s10, %s20_s10 }
   0xa   :  { %p126_p3 = scmp.ne.s32.totalorder %s20_s10, %s125_s18  ;;  %p131_p5 = scmp.lt.s32.totalorder %s125_s18, %s125_s18 }
   0xc   :  { %p132_p6 = por %p131_p5, %p130_p4 }
   0xe   :  { %p133_p7 = pnand %p132_p6, %p126_p3 }
  0x10   :  { %136 = shalt.err (!%p133_p7)
}
  0x11   :  { %s188_s19 = smov 128   ;;  %s189_s20 = smov 8  }
  0x12   :  { %25 = dma.hbm_to_vmem [thread:$0]  %s252_s0, 256, %s20_s10, [#allocation5], %s188_s19, %s188_s19, %s189_s20  }
  0x13   :  { %s190_s23 = smov [#allocation7]   ;;  %s137_s27 = scalar_lea.hbm %s253_s1, 256 }
  0x14   :  { %s35_s24 = sshll.u32 %s190_s23, 4  ;;  %p138_p8 = scmp.ne.s32.totalorder %s253_s1, %s137_s27  ;;  %s36_s24 = int_to_ptr.vmem [resolvable:$true] %s35_s24 }
  0x15   :  { %p141_p9 = scmp.lt.u32.totalorder %s137_s27, %s253_s1 }
  0x17   :  { %p143_p10 = pnand %p141_p9, %p138_p8 }
  0x19   :  { %146 = shalt.err (!%p143_p10)
}
  0x1a   :  { %s147_s4 = scalar_lea.vmem %s36_s24, 256  ;;  %p152_p12 = scmp.lt.s32.totalorder %s36_s24, %s36_s24 }
  0x1b   :  { %p148_p11 = scmp.ne.s32.totalorder %s36_s24, %s147_s4  ;;  %p153_p13 = scmp.lt.s32.totalorder %s147_s4, %s147_s4 }
  0x1d   :  { %p154_p0 = por %p153_p13, %p152_p12 }
  0x1f   :  { %p155_p1 = pnand %p154_p0, %p148_p11 }
  0x21   :  { %158 = shalt.err (!%p155_p1)
}
  0x22   :  { %41 = dma.hbm_to_vmem [thread:$0]  %s253_s1, 256, %s36_s24, [#allocation8], %s188_s19, %s188_s19, %s189_s20  }
  0x23   :  { %181 = dma.done.wait [#allocation5], 256  }
  0x24   :  { %182 = vsyncadd [#allocation5], 4294967040 }
  0x25   :  { %183 = dma.done.wait [#allocation8], 256  }
  0x26   :  { %184 = vsyncadd [#allocation8], 4294967040  ;;  %v58_v0 = vld [vmem:[#allocation4] sm:$0xff]  ;;  %v59_v1 = vld [vmem:[#allocation4 + $0x8] sm:$0xff]  ;;  %s191_s6 = smov [#allocation9]  }
  0x27   :  { %v60_v2 = vld [vmem:[#allocation7] sm:$0xff]  ;;  %v61_v3 = vld [vmem:[#allocation7 + $0x8] sm:$0xff]  ;;  %v62_v4 = vand.u32 2147483647, %v58_v0  ;;  %v63_v5 = vand.u32 2147483647, %v59_v1 }
  0x28   :  { %v64_v6 = vand.u32 2147483647, %v60_v2  ;;  %v65_v7 = vand.u32 2147483647, %v61_v3  ;;  %vm70_vm0 = vcmp.ne.f32.partialorder %v58_v0, 0.85 }
  0x29   :  { %vm71_vm1 = vcmp.ne.f32.partialorder %v59_v1, 0.85  ;;  %s97_s1 = sshll.u32 %s191_s6, 4  ;;  %s98_s1 = int_to_ptr.vmem [resolvable:$true] %s97_s1 }
  0x2a   :  { %v66_v8 = vmul.f32 %v64_v6, %v62_v4  ;;  %v67_v9 = vmul.f32 %v65_v7, %v63_v5  ;;  %v68_v10 = vadd.f32 %v64_v6, %v62_v4  ;;  %v69_v11 = vadd.f32 %v65_v7, %v63_v5  ;;  %s159_s7 = scalar_lea.vmem %s98_s1, 256  ;;  %p164_p3 = scmp.lt.s32.totalorder %s98_s1, %s98_s1 }
  0x2b   :  { %p160_p2 = scmp.ne.s32.totalorder %s98_s1, %s159_s7  ;;  %p165_p4 = scmp.lt.s32.totalorder %s159_s7, %s159_s7 }
  0x2c   :  { %v72_v12 = vsel %vm70_vm0, %v66_v8, 0.0  ;;  %v73_v13 = vsel %vm71_vm1, %v67_v9, 0.0  ;;  %v74_v14 = vsel %vm70_vm0, %v68_v10, 0.0  ;;  %v75_v15 = vsel %vm71_vm1, %v69_v11, 0.0 }
  0x2d   :  { %v77_v16 = vadd.f32 %v73_v13, %v72_v12  ;;  %v81_v17 = vadd.f32 %v75_v15, %v74_v14  ;;  %p166_p5 = por %p165_p4, %p164_p3 }
  0x2f   :  { %88 = vst [vmem:[#allocation9] sm:$0xff] %v77_v16  ;;  %91 = vst [vmem:[#allocation9 + $0x8] sm:$0xff] %v81_v17  ;;  %p167_p6 = pnand %p166_p5, %p160_p2 }
  0x31   :  { %170 = shalt.err (!%p167_p6)
}
  0x32   :  { %s171_s10 = scalar_lea.hbm %s254_s2, 256 }
  0x33   :  { %p172_p7 = scmp.ne.s32.totalorder %s254_s2, %s171_s10  ;;  %p175_p8 = scmp.lt.u32.totalorder %s171_s10, %s254_s2 }
  0x35   :  { %p177_p9 = pnand %p175_p8, %p172_p7 }
  0x37   :  { %180 = shalt.err (!%p177_p9)
}
  0x38   :  { %103 = dma.vmem_to_hbm [thread:$0]  %s98_s1, 256, %s254_s2, [#allocation6], %s188_s19, %s188_s19, %s189_s20  }
  0x39   :  { %185 = dma.done.wait [#allocation6], 256  }
  0x3a   :  { %186 = vsyncadd [#allocation6], 4294967040 }
  0x3b   :  { %107 = vsyncpa [#allocation5], 1 }
  0x3c   :  { %108 = vsyncpa [#allocation8], 1 }
  0x3d   :  { %109 = vsyncpa [#allocation6], 1 }

</bundles_post_ra>
